<compile_context>
chip_gen: v7x
topology: tpu7x:2x2x1
jax: 0.10.0
libtpu: 0.0.40
codegen_flags: <defaults>
</compile_context>

<pallas_src>
import functools

import jax
import jax.numpy as jnp
from jax.experimental import pallas as pl
from jax.experimental.pallas import tpu as pltpu

_LANE = 128      # lane width  (last dim)
_SUBLANE = 8     # sublane width (second-to-last dim)


def _round_up(x, m):
    return ((x + m - 1) // m) * m


def _supports_bf16_elementwise():
    """bf16 VPU/EUP exists on v6e/v7x; keep f32 elementwise on v5e and older."""
    try:
        kind = jax.devices()[0].device_kind.lower()
    except Exception:
        return False
    return ("v6" in kind) or ("v7" in kind)


def _choose_tile_b(batch, tile_b_req):
    """Pick a batch tile: multiple of 8, minimal pad waste, >=4 grid steps when
    the batch allows (v7x megacore pipelining), large tiles to amortize the
    ~0.35us per-grid-step overhead."""
    tile_b_req = max(_SUBLANE, _round_up(tile_b_req, _SUBLANE))
    if batch <= tile_b_req:
        return _round_up(batch, _SUBLANE)
    candidates = [c for c in (1024, 512, 256, 128) if c <= tile_b_req] or [tile_b_req]
    best_key, best_c = None, None
    for c in candidates:
        bp = _round_up(batch, c)
        grid = bp // c
        waste = bp - batch
        key = (0 if grid >= 4 else 1, waste, -c)
        if best_key is None or key < best_key:
            best_key, best_c = key, c
    return best_c


def _mlp_kernel(n_layers_total, out_dims, ew_bf16, x_ref, *refs):
    """Fused MLP forward on one batch tile.

    refs = (w0_ref, ..., w_{L-1}_ref, bias_pack_ref, out_ref)
      * weights: bf16, VMEM-resident across the whole grid (block index (0,0))
      * bias_pack: f32 (8-padded-rows, max_out), row i = layer i bias
      * x tile arrives already in bf16 (wrapper cast, halves HBM reads)
    tanh after every Linear except the last one. MXU accumulates in f32;
    elementwise runs in bf16 on v6e/v7x, f32 on v5e.
    """
    out_ref = refs[-1]
    bias_ref = refs[-2]
    w_refs = refs[:-2]
    assert len(w_refs) == n_layers_total

    h = x_ref[...]                                        # bf16 (tile_b, ob_dim)
    for i in range(n_layers_total):
        o = out_dims[i]
        acc = jnp.dot(h, w_refs[i][...],
                      preferred_element_type=jnp.float32)  # f32 (tile_b, o)
        b = bias_ref[i:i + 1, :o]                          # f32 (1, o)
        if i < n_layers_total - 1:
            if ew_bf16:
                h = jnp.tanh(acc.astype(jnp.bfloat16) + b.astype(jnp.bfloat16))
            else:
                h = jnp.tanh(acc + b).astype(jnp.bfloat16)
        else:
            out_ref[...] = (acc + b).astype(out_ref.dtype)


def prepare_params(params):
    """One-time parameter prep (hoisted out of the per-call forward).

    params: list of (W, b) with W (in_features, out_features), b (out_features,)
    Returns (weights, bias_pack):
      weights:   tuple of bf16 arrays; hidden out dims zero-padded to 128 lanes
                 (padded units are tanh(0)=0 and hit zero weight rows next, so
                 the math is exact); final layer output stays at true ac_dim.
      bias_pack: f32 (round_up(L,8), max_out) with row i = layer i bias.
    """
    n_layers_total = len(params)
    in_dims = [params[0][0].shape[0]] + [w.shape[1] for (w, _) in params[:-1]]
    out_dims_p = ([_round_up(w.shape[1], _LANE) for (w, _) in params[:-1]]
                  + [params[-1][0].shape[1]])
    in_dims_p = [in_dims[0]] + out_dims_p[:-1]

    weights = []
    for li, (w, _) in enumerate(params):
        w_p = jnp.zeros((in_dims_p[li], out_dims_p[li]), jnp.bfloat16)
        w_p = w_p.at[:w.shape[0], :w.shape[1]].set(w.astype(jnp.bfloat16))
        weights.append(w_p)

    max_out_p = max(out_dims_p)
    bias_pack = jnp.zeros((_round_up(n_layers_total, _SUBLANE), max_out_p),
                          jnp.float32)
    for li, (_, b) in enumerate(params):
        bias_pack = bias_pack.at[li, :b.shape[0]].set(b.astype(jnp.float32))

    return tuple(weights), bias_pack


def mlp_policy_forward(x, weights, bias_pack, *, tile_b=1024):
    """Run MLPPolicy.forward(x) as a single fused Pallas kernel.

    x:         (batch, ob_dim) float32 (or bf16) observations
    weights:   output of prepare_params()[0]
    bias_pack: output of prepare_params()[1]
    returns    (batch, ac_dim) float32
    """
    batch, ob_dim = x.shape
    n_layers_total = len(weights)
    assert weights[0].shape[0] == ob_dim
    ac_dim = weights[-1].shape[1]
    out_dims = tuple(w.shape[1] for w in weights)

    tile_b = _choose_tile_b(batch, tile_b)
    batch_p = _round_up(batch, tile_b)

    # Only batch is padded; features stay at true ob_dim (last block dim equals
    # the full array dim, so the (8,128) rule is satisfied). bf16 halves reads.
    x_p = x.astype(jnp.bfloat16)
    if batch_p != batch:
        x_p = jnp.pad(x_p, ((0, batch_p - batch), (0, 0)))

    ew_bf16 = _supports_bf16_elementwise()

    in_specs = [pl.BlockSpec((tile_b, ob_dim), lambda i: (i, 0))]
    for w in weights:
        in_specs.append(pl.BlockSpec(w.shape, lambda i: (0, 0)))   # VMEM-resident
    in_specs.append(pl.BlockSpec(bias_pack.shape, lambda i: (0, 0)))

    out_shape = jax.ShapeDtypeStruct((batch_p, ac_dim), jnp.float32)
    out_spec = pl.BlockSpec((tile_b, ac_dim), lambda i: (i, 0))

    # ---- advisory cost estimate -------------------------------------------
    flops = 2 * batch_p * sum(w.shape[0] * w.shape[1] for w in weights)
    transcendentals = batch_p * sum(out_dims[:-1])
    bytes_accessed = (x_p.size * 2 + batch_p * ac_dim * 4
                      + sum(w.size * 2 for w in weights) + bias_pack.size * 4)

    # ---- VMEM budget for the all-weights-resident design --------------------
    vmem_est = (sum(w.size * 2 for w in weights) + bias_pack.size * 4
                + 2 * (tile_b * ob_dim * 2 + tile_b * ac_dim * 4))
    cp_kwargs = dict(dimension_semantics=("parallel",))
    if vmem_est > 16 * 2 ** 20:   # above the smallest default scoped limit
        cp_kwargs["vmem_limit_bytes"] = min(
            _round_up(int(vmem_est * 3 // 2), 2 ** 20), 64 * 2 ** 20)
    # TODO(synk): for hidden sizes beyond ~2K the resident weights would blow
    # v7x's 64 MiB VMEM; add an out-feature grid axis in that regime.

    kernel = functools.partial(_mlp_kernel, n_layers_total, out_dims, ew_bf16)
    grid = (batch_p // tile_b,)

    out = pl.pallas_call(
        kernel,
        out_shape=out_shape,
        grid=grid,
        in_specs=in_specs,
        out_specs=out_spec,
        compiler_params=pltpu.CompilerParams(**cp_kwargs),
        cost_estimate=pl.CostEstimate(
            flops=flops,
            transcendentals=transcendentals,
            bytes_accessed=bytes_accessed),
    )(x_p, *weights, bias_pack)

    if batch_p != batch:
        out = out[:batch]
    return out


def init_mlp_params(key, ob_dim, ac_dim, n_layers, size):
    """Deterministic init mimicking PyTorch nn.Linear default U(-1/sqrt(in), 1/sqrt(in))."""
    dims = [ob_dim] + [size] * n_layers + [ac_dim]
    params = []
    for i in range(len(dims) - 1):
        fan_in, fan_out = dims[i], dims[i + 1]
        key, kw, kb = jax.random.split(key, 3)
        bound = 1.0 / jnp.sqrt(jnp.float32(fan_in))
        w = jax.random.uniform(kw, (fan_in, fan_out), jnp.float32, -bound, bound)
        b = jax.random.uniform(kb, (fan_out,), jnp.float32, -bound, bound)
        params.append((w, b))
    return params


def mlp_policy_forward_ref_f32(x, params):
    """Pure-JAX f32 reference (exact module semantics)."""
    h = x
    n = len(params)
    for i, (w, b) in enumerate(params):
        h = h @ w + b
        if i < n - 1:
            h = jnp.tanh(h)
    return h


def mlp_policy_forward_ref_matched(x, params, ew_bf16):
    """Pure-JAX reference mirroring the kernel's compute path exactly
    (bf16 MXU operands, f32 accumulate, platform-dependent elementwise dtype)."""
    h = x.astype(jnp.bfloat16)
    n = len(params)
    out = None
    for i, (w, b) in enumerate(params):
        acc = jnp.dot(h, w.astype(jnp.bfloat16),
                      preferred_element_type=jnp.float32)
        if i < n - 1:
            if ew_bf16:
                h = jnp.tanh(acc.astype(jnp.bfloat16) + b.astype(jnp.bfloat16))
            else:
                h = jnp.tanh(acc + b.astype(jnp.float32)).astype(jnp.bfloat16)
        else:
            out = acc + b.astype(jnp.float32)
    return out


if __name__ == "__main__":
    # Small, module-consistent shapes; batch deliberately NOT a multiple of 8
    # so the batch-pad / tile-shrink path is exercised (tile_b -> 264, grid=(1,)).
    batch, ob_dim, ac_dim, n_layers, size = 260, 16, 4, 2, 32

    key = jax.random.PRNGKey(0)
    key, kx = jax.random.split(key)
    x = jax.random.normal(kx, (batch, ob_dim), dtype=jnp.float32)

    params = init_mlp_params(key, ob_dim, ac_dim, n_layers, size)

    # One-time parameter prep (padding / bf16 cast / bias packing hoisted here).
    weights, bias_pack = prepare_params(params)

    forward = jax.jit(functools.partial(mlp_policy_forward, tile_b=1024))
    out = forward(x, weights, bias_pack)
    out = jax.block_until_ready(out)
    assert out.shape == (batch, ac_dim)

    # Tight check against a reference using the exact same compute path.
    ew_bf16 = _supports_bf16_elementwise()
    ref_matched = mlp_policy_forward_ref_matched(x, params, ew_bf16)
    assert jnp.allclose(out, ref_matched, atol=2e-3, rtol=2e-3), \
        "mismatch vs path-matched reference"

    # Loose check against the exact f32 module semantics (bf16 quantization).
    ref_f32 = mlp_policy_forward_ref_f32(x, params)
    assert jnp.allclose(out, ref_f32, atol=3e-2, rtol=3e-2), \
        "mismatch vs f32 reference"

    # TODO(synk): get_action (sampling/argmax glue), update (loss + Adam step),
    # and save/restore are host-side training glue with no kernel hot path;
    # only forward() is implemented in Pallas.
    print("KERNEL_OK")
</pallas_src>

<mosaic_0001>
module attributes {stable_mosaic.version = 11 : i64} {
  func.func @_mlp_kernel(%arg0: i32, %arg1: memref<264x16xbf16, #tpu.memory_space<vmem>>, %arg2: memref<16x128xbf16, #tpu.memory_space<vmem>>, %arg3: memref<128x128xbf16, #tpu.memory_space<vmem>>, %arg4: memref<128x4xbf16, #tpu.memory_space<vmem>>, %arg5: memref<8x128xf32, #tpu.memory_space<vmem>>, %arg6: memref<264x4xf32, #tpu.memory_space<vmem>>) attributes {dimension_semantics = [#tpu.dimension_semantics<parallel>], iteration_bounds = array<i64: 1>, scalar_prefetch = 0 : i64, scratch_operands = 0 : i64, tpu.core_type = #tpu.core_type<tc>, window_params = [{transform_indices = @transform_0, window_bounds = array<i64: 264, 16>}, {pipeline_mode = #tpu.pipeline_mode<synchronous>, transform_indices = @transform_1, window_bounds = array<i64: 16, 128>}, {pipeline_mode = #tpu.pipeline_mode<synchronous>, transform_indices = @transform_2, window_bounds = array<i64: 128, 128>}, {pipeline_mode = #tpu.pipeline_mode<synchronous>, transform_indices = @transform_3, window_bounds = array<i64: 128, 4>}, {pipeline_mode = #tpu.pipeline_mode<synchronous>, transform_indices = @transform_4, window_bounds = array<i64: 8, 128>}, {transform_indices = @transform_5, window_bounds = array<i64: 264, 4>}]} {
    %c0 = arith.constant 0 : index
    %c0_0 = arith.constant 0 : index
    %0 = vector.load %arg1[%c0, %c0_0] : memref<264x16xbf16, #tpu.memory_space<vmem>>, vector<264x16xbf16>
    %c0_1 = arith.constant 0 : index
    %c0_2 = arith.constant 0 : index
    %1 = vector.load %arg2[%c0_1, %c0_2] : memref<16x128xbf16, #tpu.memory_space<vmem>>, vector<16x128xbf16>
    %cst = arith.constant dense<0.000000e+00> : vector<264x128xf32>
    %2 = tpu.matmul %0, %1, %cst {dimension_numbers = #tpu.dot_dimension_numbers<[1], [0], [0], [1], [0, 0, 1, 1], [], []>} : vector<264x16xbf16>, vector<16x128xbf16>, vector<264x128xf32> -> vector<264x128xf32>
    %c0_3 = arith.constant 0 : index
    %c0_4 = arith.constant 0 : index
    %3 = vector.load %arg5[%c0_3, %c0_4] : memref<8x128xf32, #tpu.memory_space<vmem>>, vector<1x128xf32>
    %4 = vector.broadcast %3 : vector<1x128xf32> to vector<264x128xf32>
    %5 = arith.addf %2, %4 : vector<264x128xf32>
    %6 = math.tanh %5 : vector<264x128xf32>
    %7 = arith.truncf %6 : vector<264x128xf32> to vector<264x128xbf16>
    %c0_5 = arith.constant 0 : index
    %c0_6 = arith.constant 0 : index
    %8 = vector.load %arg3[%c0_5, %c0_6] : memref<128x128xbf16, #tpu.memory_space<vmem>>, vector<128x128xbf16>
    %cst_7 = arith.constant dense<0.000000e+00> : vector<264x128xf32>
    %9 = tpu.matmul %7, %8, %cst_7 {dimension_numbers = #tpu.dot_dimension_numbers<[1], [0], [0], [1], [0, 0, 1, 1], [], []>} : vector<264x128xbf16>, vector<128x128xbf16>, vector<264x128xf32> -> vector<264x128xf32>
    %c1 = arith.constant 1 : index
    %c0_8 = arith.constant 0 : index
    %10 = vector.load %arg5[%c1, %c0_8] : memref<8x128xf32, #tpu.memory_space<vmem>>, vector<1x128xf32>
    %11 = vector.broadcast %10 : vector<1x128xf32> to vector<264x128xf32>
    %12 = arith.addf %9, %11 : vector<264x128xf32>
    %13 = math.tanh %12 : vector<264x128xf32>
    %14 = arith.truncf %13 : vector<264x128xf32> to vector<264x128xbf16>
    %c0_9 = arith.constant 0 : index
    %c0_10 = arith.constant 0 : index
    %15 = vector.load %arg4[%c0_9, %c0_10] : memref<128x4xbf16, #tpu.memory_space<vmem>>, vector<128x4xbf16>
    %cst_11 = arith.constant dense<0.000000e+00> : vector<264x4xf32>
    %16 = tpu.matmul %14, %15, %cst_11 {dimension_numbers = #tpu.dot_dimension_numbers<[1], [0], [0], [1], [0, 0, 1, 1], [], []>} : vector<264x128xbf16>, vector<128x4xbf16>, vector<264x4xf32> -> vector<264x4xf32>
    %c2 = arith.constant 2 : index
    %c0_12 = arith.constant 0 : index
    %17 = vector.load %arg5[%c2, %c0_12] : memref<8x128xf32, #tpu.memory_space<vmem>>, vector<1x4xf32>
    %18 = vector.broadcast %17 : vector<1x4xf32> to vector<264x4xf32>
    %19 = arith.addf %16, %18 : vector<264x4xf32>
    %c0_13 = arith.constant 0 : index
    %c0_14 = arith.constant 0 : index
    %20 = vector.load %arg6[%c0_13, %c0_14] : memref<264x4xf32, #tpu.memory_space<vmem>>, vector<264x4xf32>
    tpu.vector_store %arg6[%c0_13, %c0_14], %19 {strides = array<i32>} : memref<264x4xf32, #tpu.memory_space<vmem>>, vector<264x4xf32>,
    return
  }
  func.func @transform_0(%arg0: i32) -> (i32, i32) {
    %c0_i32 = arith.constant 0 : i32
    %c0_i32_0 = arith.constant 0 : i32
    return %arg0, %c0_i32 : i32, i32
  }
  func.func @transform_1(%arg0: i32) -> (i32, i32) {
    %c0_i32 = arith.constant 0 : i32
    %c0_i32_0 = arith.constant 0 : i32
    %c0_i32_1 = arith.constant 0 : i32
    return %c0_i32, %c0_i32_0 : i32, i32
  }
  func.func @transform_2(%arg0: i32) -> (i32, i32) {
    %c0_i32 = arith.constant 0 : i32
    %c0_i32_0 = arith.constant 0 : i32
    %c0_i32_1 = arith.constant 0 : i32
    return %c0_i32, %c0_i32_0 : i32, i32
  }
  func.func @transform_3(%arg0: i32) -> (i32, i32) {
    %c0_i32 = arith.constant 0 : i32
    %c0_i32_0 = arith.constant 0 : i32
    %c0_i32_1 = arith.constant 0 : i32
    return %c0_i32, %c0_i32_0 : i32, i32
  }
  func.func @transform_4(%arg0: i32) -> (i32, i32) {
    %c0_i32 = arith.constant 0 : i32
    %c0_i32_0 = arith.constant 0 : i32
    %c0_i32_1 = arith.constant 0 : i32
    return %c0_i32, %c0_i32_0 : i32, i32
  }
  func.func @transform_5(%arg0: i32) -> (i32, i32) {
    %c0_i32 = arith.constant 0 : i32
    %c0_i32_0 = arith.constant 0 : i32
    return %arg0, %c0_i32 : i32, i32
  }
}

</mosaic_0001>

<bundles_post_ra>
// kernel: mlp_policy_forward.1
= control target key start
LH: loop header
LB: loop body
LE: loop exit
PB: predicated region body
PF: predicated region fallthrough
CT: control target
= control target key end

     0   :  { %v1512_v0 = vmov 0.0   ;;  %vm1513_vm0 = vmmov 0   ;;  %vm150_vm1 = vcmask 130048   ;;  %vm944_vm2 = vcmask 31744   ;;  %s2074_s1 = inlined_call_operand.vmem [shape: bf16[16,128], index: 1, kind: input, shape index: {}]   ;;  %s2075_s0 = inlined_call_operand.vmem [shape: bf16[264,16], index: 0, kind: input, shape index: {}]   ;;  %s2076_s2 = inlined_call_operand.vmem [shape: bf16[128,128], index: 2, kind: input, shape index: {}]   ;;  %s2077_s4 = inlined_call_operand.vmem [shape: f32[8,128], index: 4, kind: input, shape index: {}]   ;;  %s2078_s3 = inlined_call_operand.vmem [shape: bf16[128,4], index: 3, kind: input, shape index: {}]   ;;  %s2079_s5 = inlined_call_operand.vmem [shape: f32[264,4], index: 5, kind: output, shape index: {}]  }
   0x1   :  { %1104 = vmatprep.subr.bf16.mxu0 %v1512_v0  ;;  %v1346_v1 = vld [vmem:[%s2074_s1] sm:$0xff]   ;;  %1106 = vmatprep.mubr.msk.bf16.mxu0 %vm1513_vm0, %v1512_v0  ;;  %v1348_v3 = vld [vmem:[%s2075_s0 + $0x8] sm:$0xff]   ;;  %v1357_v5 = vld [vmem:[%s2075_s0 + $0x50] sm:$0xff]  }
   0x2   :  { %v1347_v2 = vld [vmem:[%s2075_s0] sm:$0xff]   ;;  %1342 = vmatprep.subr.bf16.mxu1 %v1512_v0  ;;  %1142 = vmatprep.mubr.msk.bf16.mxu1 %vm1513_vm0, %v1512_v0  ;;  %v1356_v4 = vld [vmem:[%s2075_s0 + $0x48] sm:$0xff]   ;;  %v1349_v6 = vld [vmem:[%s2075_s0 + $0x10] sm:$0xff]  }
   0x3   :  { %1105 = vmatpush3.bf16.msra.mxu0 %v1346_v1  ;;  %1343 = vmatpush3.bf16.msra.mxu1 %v1346_v1  ;;  %v1364_v7 = vld [vmem:[%s2076_s2] sm:$0xff]   ;;  %v1365_v8 = vld [vmem:[%s2076_s2 + $0x8] sm:$0xff]   ;;  %v1358_v9 = vld [vmem:[%s2075_s0 + $0x58] sm:$0xff]  }
   0x4   :  { %1174 = vmatprep.subr.bf16.mxu1 %v1512_v0  ;;  %1258 = vmatprep.subr.bf16.mxu0 %v1512_v0  ;;  %v1350_v10 = vld [vmem:[%s2075_s0 + $0x18] sm:$0xff]   ;;  %v1366_v11 = vld [vmem:[%s2076_s2 + $0x10] sm:$0xff]   ;;  %v1359_v13 = vld [vmem:[%s2075_s0 + $0x60] sm:$0xff]  }
   0x5   :  { %v1367_v12 = vld [vmem:[%s2076_s2 + $0x18] sm:$0xff]   ;;  %v1351_v14 = vld [vmem:[%s2075_s0 + $0x20] sm:$0xff]   ;;  %v1369_v16 = vld [vmem:[%s2076_s2 + $0x28] sm:$0xff]  }
   0x6   :  { %1107 = vmatmul.mubr.msk.bf16.vlgmr.msra.gmra.mrb[0].mxu0 %vm150_vm1, %v1347_v2  ;;  %1143 = vmatmul.mubr.msk.bf16.vlgmr.msra.gmra.mrb[0].mxu1 %vm150_vm1, %v1356_v4  ;;  %v1368_v15 = vld [vmem:[%s2076_s2 + $0x20] sm:$0xff]   ;;  %v1360_v17 = vld [vmem:[%s2075_s0 + $0x68] sm:$0xff]   ;;  %v1361_v19 = vld [vmem:[%s2075_s0 + $0x70] sm:$0xff]  }
   0x7   :  { %1110 = vmatprep.mubr.msk.bf16.mxu0 %vm1513_vm0, %v1512_v0  ;;  %1146 = vmatprep.mubr.msk.bf16.mxu1 %vm1513_vm0, %v1512_v0  ;;  %v1352_v18 = vld [vmem:[%s2075_s0 + $0x28] sm:$0xff]   ;;  %v1353_v20 = vld [vmem:[%s2075_s0 + $0x30] sm:$0xff]   ;;  %v1362_v21 = vld [vmem:[%s2075_s0 + $0x78] sm:$0xff]  }
   0x8   :  { %1175 = vmatpush3.bf16.msra.mxu1 %v1364_v7  ;;  %v1354_v22 = vld [vmem:[%s2075_s0 + $0x38] sm:$0xff]   ;;  %v1363_v23 = vld [vmem:[%s2075_s0 + $0x80] ss:$0 sps:$4 sm:$0xff]   ;;  %v1370_v25 = vld [vmem:[%s2076_s2 + $0x30] sm:$0xff]  }
   0x9   :  { %1176 = vmatprep.subr.bf16.mxu1 %v1512_v0  ;;  %v1355_v24 = vld [vmem:[%s2075_s0 + $0x40] sm:$0xff]   ;;  %v1371_v26 = vld [vmem:[%s2076_s2 + $0x38] sm:$0xff]   ;;  %v1373_v1 = vld [vmem:[%s2078_s3 + $0x8] sm:$0xff]  }
   0xa   :  { %v1691_v27 = vld [vmem:[%s2077_s4] ss:$0 sm:$0xff] }
   0xb   :  { %v1372_v61 = vld [vmem:[%s2078_s3] sm:$0xff]  }
   0xc   :  { %1177 = vmatpush3.bf16.msra.mxu1 %v1365_v8  ;;  %1259 = vmatpush3.bf16.msra.mxu0 %v1372_v61 }
   0xd   :  { %1178 = vmatprep.subr.bf16.mxu1 %v1512_v0  ;;  %1260 = vmatprep.subr.bf16.mxu0 %v1512_v0 }
   0xe   :  { %1111 = vmatmul.mubr.msk.bf16.gmra.mrb[4].mxu0 %vm150_vm1, %v1348_v3  ;;  %1147 = vmatmul.mubr.msk.bf16.gmra.mrb[4].mxu1 %vm150_vm1, %v1357_v5 }
   0xf   :  { %1114 = vmatprep.mubr.msk.bf16.mxu0 %vm1513_vm0, %v1512_v0  ;;  %1150 = vmatprep.mubr.msk.bf16.mxu1 %vm1513_vm0, %v1512_v0 }
  0x10   :  { %1179 = vmatpush3.bf16.msra.mxu1 %v1366_v11  ;;  %1261 = vmatpush3.bf16.msra.mxu0 %v1373_v1 }
  0x11   :  { %1180 = vmatprep.subr.bf16.mxu1 %v1512_v0  ;;  %1262 = vmatprep.subr.bf16.mxu0 %v1512_v0 }
  0x14   :  { %1181 = vmatpush3.bf16.msra.mxu1 %v1367_v12 }
  0x15   :  { %1182 = vmatprep.subr.bf16.mxu1 %v1512_v0 }
  0x16   :  { %1115 = vmatmul.mubr.msk.bf16.gmra.mrb[8].mxu0 %vm150_vm1, %v1349_v6  ;;  %1151 = vmatmul.mubr.msk.bf16.gmra.mrb[8].mxu1 %vm150_vm1, %v1358_v9 }
  0x17   :  { %1118 = vmatprep.mubr.msk.bf16.mxu0 %vm1513_vm0, %v1512_v0  ;;  %1154 = vmatprep.mubr.msk.bf16.mxu1 %vm1513_vm0, %v1512_v0 }
  0x18   :  { %1183 = vmatpush3.bf16.msra.mxu1 %v1368_v15 }
  0x19   :  { %1184 = vmatprep.subr.bf16.mxu1 %v1512_v0 }
  0x1c   :  { %1185 = vmatpush3.bf16.msra.mxu1 %v1369_v16 }
  0x1d   :  { %1186 = vmatprep.subr.bf16.mxu1 %v1512_v0 }
  0x1e   :  { %1119 = vmatmul.mubr.msk.bf16.gmra.mrb[12].mxu0 %vm150_vm1, %v1350_v10  ;;  %1155 = vmatmul.mubr.msk.bf16.gmra.mrb[12].mxu1 %vm150_vm1, %v1359_v13  ;;  %v1374_v13 = vld [vmem:[%s2078_s3 + $0x10] sm:$0xff]  }
  0x1f   :  { %1122 = vmatprep.mubr.msk.bf16.mxu0 %vm1513_vm0, %v1512_v0  ;;  %1158 = vmatprep.mubr.msk.bf16.mxu1 %vm1513_vm0, %v1512_v0 }
  0x20   :  { %1187 = vmatpush3.bf16.msra.mxu1 %v1370_v25  ;;  %1263 = vmatpush3.bf16.msra.mxu0 %v1374_v13 }
  0x21   :  { %1188 = vmatprep.subr.bf16.mxu1 %v1512_v0  ;;  %1264 = vmatprep.subr.bf16.mxu0 %v1512_v0 }
  0x24   :  { %1189 = vmatpush3.bf16.msra.mxu1 %v1371_v26 }
  0x26   :  { %1123 = vmatmul.mubr.msk.bf16.gmra.mrb[16].mxu0 %vm150_vm1, %v1351_v14  ;;  %1159 = vmatmul.mubr.msk.bf16.gmra.mrb[16].mxu1 %vm150_vm1, %v1360_v17 }
  0x27   :  { %1126 = vmatprep.mubr.msk.bf16.mxu0 %vm1513_vm0, %v1512_v0  ;;  %1162 = vmatprep.mubr.msk.bf16.mxu1 %vm1513_vm0, %v1512_v0 }
  0x2e   :  { %1127 = vmatmul.mubr.msk.bf16.gmra.mrb[20].mxu0 %vm150_vm1, %v1352_v18  ;;  %1163 = vmatmul.mubr.msk.bf16.gmra.mrb[20].mxu1 %vm150_vm1, %v1361_v19 }
  0x2f   :  { %1130 = vmatprep.mubr.msk.bf16.mxu0 %vm1513_vm0, %v1512_v0  ;;  %1166 = vmatprep.mubr.msk.bf16.mxu1 %vm1513_vm0, %v1512_v0 }
  0x36   :  { %1131 = vmatmul.mubr.msk.bf16.gmra.mrb[24].mxu0 %vm150_vm1, %v1353_v20  ;;  %1167 = vmatmul.mubr.msk.bf16.gmra.mrb[24].mxu1 %vm150_vm1, %v1362_v21  ;;  %v1375_v21 = vld [vmem:[%s2078_s3 + $0x18] sm:$0xff]  }
  0x37   :  { %1134 = vmatprep.mubr.msk.bf16.mxu0 %vm1513_vm0, %v1512_v0  ;;  %1170 = vmatprep.mubr.msk.bf16.mxu1 %vm1513_vm0, %v1512_v0 }
  0x38   :  { %1265 = vmatpush3.bf16.msra.mxu0 %v1375_v21 }
  0x39   :  { %1266 = vmatprep.subr.bf16.mxu0 %v1512_v0 }
  0x3e   :  { %1135 = vmatmul.mubr.msk.bf16.gmra.mrb[28].mxu0 %vm150_vm1, %v1354_v22  ;;  %1171 = vmatmul.mubr.msk.bf16.gmra.mrb[28].mxu1 %vm150_vm1, %v1363_v23 }
  0x3f   :  { %1138 = vmatprep.mubr.msk.bf16.mxu0 %vm1513_vm0, %v1512_v0  ;;  %1190 = vmatprep.mubr.msk.bf16.mxu1 %vm1513_vm0, %v1512_v0 }
  0x46   :  { %1139 = vmatmul.mubr.msk.bf16.gmra.mrb[32].mxu0 %vm150_vm1, %v1355_v24 }
  0x47   :  { %1274 = vmatprep.mubr.msk.bf16.mxu0 %vm1513_vm0, %v1512_v0 }
  0xd9   :  { %v236_v28 = vpop.f32.mrb[0].mxu0  ;;  %v308_v34 = vpop.f32.mrb[0].mxu1 }
  0xda   :  { %v237_v29 = vadd.f32 %v1691_v27, %v236_v28  ;;  %v1108_v30 = vpop.f32.mrb[1].mxu0  ;;  %v309_v36 = vadd.f32 %v1691_v27, %v308_v34  ;;  %v1144_v37 = vpop.f32.mrb[1].mxu1  ;;  %v1376_v34 = vld [vmem:[%s2078_s3 + $0x20] sm:$0xff]  }
  0xdb   :  { %v239_v31 = vpop.f32.mrb[2].mxu0  ;;  %v311_v40 = vpop.f32.mrb[2].mxu1  ;;  %1267 = vmatpush3.bf16.msra.mxu0 %v1376_v34 }
  0xdc   :  { %v240_v32 = vadd.f32 %v1691_v27, %v239_v31  ;;  %v1109_v33 = vpop.f32.mrb[3].mxu0  ;;  %1380 = vtanh.f32 %v237_v29  ;;  %v312_v42 = vadd.f32 %v1691_v27, %v311_v40  ;;  %v1145_v43 = vpop.f32.mrb[3].mxu1  ;;  %1268 = vmatprep.subr.bf16.mxu0 %v1512_v0 }
  0xde   :  { %1382 = vtanh.f32 %v240_v32 }
  0xdf   :  { %1384 = vtanh.f32 %v309_v36 }
  0xe1   :  { %v244_v35 = vpop.f32.mrb[4].mxu0  ;;  %v316_v48 = vpop.f32.mrb[4].mxu1 }
  0xe2   :  { %v245_v38 = vadd.f32 %v1691_v27, %v244_v35  ;;  %v1112_v39 = vpop.f32.mrb[5].mxu0  ;;  %v317_v51 = vadd.f32 %v1691_v27, %v316_v48  ;;  %v1148_v52 = vpop.f32.mrb[5].mxu1 }
  0xe3   :  { %v247_v41 = vpop.f32.mrb[6].mxu0  ;;  %v319_v55 = vpop.f32.mrb[6].mxu1 }
  0xe4   :  { %1386 = vtanh.f32 %v245_v38  ;;  %v248_v44 = vadd.f32 %v1691_v27, %v247_v41  ;;  %v1113_v45 = vpop.f32.mrb[7].mxu0  ;;  %v320_v57 = vadd.f32 %v1691_v27, %v319_v55  ;;  %v1149_v58 = vpop.f32.mrb[7].mxu1 }
  0xe5   :  { %1388 = vtanh.f32 %v312_v42  ;;  %v1377_v42 = vld [vmem:[%s2078_s3 + $0x28] sm:$0xff]  }
  0xe6   :  { %1390 = vtanh.f32 %v248_v44  ;;  %v1381_v46 = vpop.eup %1380  ;;  %1269 = vmatpush3.bf16.msra.mxu0 %v1377_v42 }
  0xe7   :  { %1392 = vtanh.f32 %v317_v51  ;;  %1270 = vmatprep.subr.bf16.mxu0 %v1512_v0 }
  0xe8   :  { %v1383_v47 = vpop.eup %1382 }
  0xe9   :  { %v252_v49 = vpop.f32.mrb[8].mxu0  ;;  %v403_v50 = vpack.c.bf16 %v1383_v47, %v1381_v46  ;;  %v1708_v62 = vpop.eup %1384 }
  0xea   :  { %v253_v53 = vadd.f32 %v1691_v27, %v252_v49  ;;  %v1116_v54 = vpop.f32.mrb[9].mxu0  ;;  %v324_v4 = vpop.f32.mrb[8].mxu1 }
  0xeb   :  { %v255_v56 = vpop.f32.mrb[10].mxu0  ;;  %1191 = vmatmul.mubr.bf16.vlgmr.msra.gmra.mrb[32].mxu1 %v403_v50  ;;  %v325_v8 = vadd.f32 %v1691_v27, %v324_v4  ;;  %v1152_v9 = vpop.f32.mrb[9].mxu1 }
  0xec   :  { %1394 = vtanh.f32 %v253_v53  ;;  %v256_v59 = vadd.f32 %v1691_v27, %v255_v56  ;;  %v1117_v60 = vpop.f32.mrb[11].mxu0  ;;  %1194 = vmatprep.mubr.msk.bf16.mxu1 %vm1513_vm0, %v1512_v0  ;;  %v327_v12 = vpop.f32.mrb[10].mxu1 }
  0xed   :  { %1396 = vtanh.f32 %v320_v57  ;;  %v328_v15 = vadd.f32 %v1691_v27, %v327_v12  ;;  %v1153_v16 = vpop.f32.mrb[11].mxu1 }
  0xee   :  { %v1387_v63 = vpop.eup %1386  ;;  %1398 = vtanh.f32 %v256_v59 }
  0xef   :  { %v1713_v2 = vpop.eup %1388  ;;  %1400 = vtanh.f32 %v325_v8 }
  0xf0   :  { %v1391_v3 = vpop.eup %1390  ;;  %v412_v5 = vpack.c.bf16 %v1713_v2, %v1708_v62  ;;  %v1379_v62 = vld [vmem:[%s2078_s3 + $0x38] sm:$0xff]  }
  0xf1   :  { %v260_v6 = vpop.f32.mrb[12].mxu0  ;;  %v404_v7 = vpack.c.bf16 %v1391_v3, %v1387_v63  ;;  %v1728_v19 = vpop.eup %1392 }
  0xf2   :  { %v261_v10 = vadd.f32 %v1691_v27, %v260_v6  ;;  %v1120_v11 = vpop.f32.mrb[13].mxu0  ;;  %v332_v24 = vpop.f32.mrb[12].mxu1 }
  0xf3   :  { %v263_v14 = vpop.f32.mrb[14].mxu0  ;;  %1195 = vmatmul.mubr.bf16.gmra.mrb[36].mxu1 %v404_v7  ;;  %v333_v29 = vadd.f32 %v1691_v27, %v332_v24  ;;  %v1156_v30 = vpop.f32.mrb[13].mxu1 }
  0xf4   :  { %1402 = vtanh.f32 %v261_v10  ;;  %v264_v17 = vadd.f32 %v1691_v27, %v263_v14  ;;  %v1121_v18 = vpop.f32.mrb[15].mxu0  ;;  %1198 = vmatprep.mubr.msk.bf16.mxu1 %vm1513_vm0, %v1512_v0  ;;  %v335_v33 = vpop.f32.mrb[14].mxu1 }
  0xf5   :  { %1404 = vtanh.f32 %v328_v15  ;;  %v336_v36 = vadd.f32 %v1691_v27, %v335_v33  ;;  %v1157_v37 = vpop.f32.mrb[15].mxu1 }
  0xf6   :  { %v1395_v20 = vpop.eup %1394  ;;  %1406 = vtanh.f32 %v264_v17 }
  0xf7   :  { %v1733_v22 = vpop.eup %1396  ;;  %1408 = vtanh.f32 %v333_v29 }
  0xf8   :  { %v1399_v23 = vpop.eup %1398  ;;  %v413_v25 = vpack.c.bf16 %v1733_v22, %v1728_v19  ;;  %v1837_v22 = vld [vmem:[%s2077_s4 + $0x1] ss:$0 sm:$0xff] }
  0xf9   :  { %v268_v26 = vpop.f32.mrb[16].mxu0  ;;  %v405_v28 = vpack.c.bf16 %v1399_v23, %v1395_v20  ;;  %v1748_v40 = vpop.eup %1400 }
  0xfa   :  { %v269_v31 = vadd.f32 %v1691_v27, %v268_v26  ;;  %v1124_v32 = vpop.f32.mrb[17].mxu0  ;;  %v340_v45 = vpop.f32.mrb[16].mxu1 }
  0xfb   :  { %v271_v35 = vpop.f32.mrb[18].mxu0  ;;  %1199 = vmatmul.mubr.bf16.gmra.mrb[40].mxu1 %v405_v28  ;;  %v341_v49 = vadd.f32 %v1691_v27, %v340_v45  ;;  %v1160_v50 = vpop.f32.mrb[17].mxu1 }
  0xfc   :  { %1410 = vtanh.f32 %v269_v31  ;;  %v272_v38 = vadd.f32 %v1691_v27, %v271_v35  ;;  %v1125_v39 = vpop.f32.mrb[19].mxu0  ;;  %1202 = vmatprep.mubr.msk.bf16.mxu1 %vm1513_vm0, %v1512_v0  ;;  %v343_v53 = vpop.f32.mrb[18].mxu1 }
  0xfd   :  { %1412 = vtanh.f32 %v336_v36  ;;  %v344_v55 = vadd.f32 %v1691_v27, %v343_v53  ;;  %v1161_v56 = vpop.f32.mrb[19].mxu1 }
  0xfe   :  { %v1403_v41 = vpop.eup %1402  ;;  %1414 = vtanh.f32 %v272_v38 }
  0xff   :  { %v1753_v43 = vpop.eup %1404  ;;  %1416 = vtanh.f32 %v341_v49 }
 0x100   :  { %v1407_v44 = vpop.eup %1406  ;;  %v414_v46 = vpack.c.bf16 %v1753_v43, %v1748_v40 }
 0x101   :  { %v276_v47 = vpop.f32.mrb[20].mxu0  ;;  %v406_v48 = vpack.c.bf16 %v1407_v44, %v1403_v41  ;;  %v1765_v59 = vpop.eup %1408 }
 0x102   :  { %v277_v51 = vadd.f32 %v1691_v27, %v276_v47  ;;  %v1128_v52 = vpop.f32.mrb[21].mxu0  ;;  %v348_v1 = vpop.f32.mrb[20].mxu1 }
 0x103   :  { %v279_v54 = vpop.f32.mrb[22].mxu0  ;;  %1203 = vmatmul.mubr.bf16.gmra.mrb[44].mxu1 %v406_v48  ;;  %v349_v7 = vadd.f32 %v1691_v27, %v348_v1  ;;  %v1164_v8 = vpop.f32.mrb[21].mxu1 }
 0x104   :  { %1418 = vtanh.f32 %v277_v51  ;;  %v280_v57 = vadd.f32 %v1691_v27, %v279_v54  ;;  %v1129_v58 = vpop.f32.mrb[23].mxu0  ;;  %1206 = vmatprep.mubr.msk.bf16.mxu1 %vm1513_vm0, %v1512_v0  ;;  %v351_v11 = vpop.f32.mrb[22].mxu1 }
 0x105   :  { %1420 = vtanh.f32 %v344_v55  ;;  %v352_v13 = vadd.f32 %v1691_v27, %v351_v11  ;;  %v1165_v14 = vpop.f32.mrb[23].mxu1 }
 0x106   :  { %v1411_v60 = vpop.eup %1410  ;;  %1422 = vtanh.f32 %v280_v57 }
 0x107   :  { %v1767_v61 = vpop.eup %1412  ;;  %1424 = vtanh.f32 %v349_v7 }
 0x108   :  { %v1415_v63 = vpop.eup %1414  ;;  %v415_v3 = vpack.c.bf16 %v1767_v61, %v1765_v59 }
 0x109   :  { %v284_v4 = vpop.f32.mrb[24].mxu0  ;;  %v407_v6 = vpack.c.bf16 %v1415_v63, %v1411_v60  ;;  %v1777_v17 = vpop.eup %1416 }
 0x10a   :  { %v285_v9 = vadd.f32 %v1691_v27, %v284_v4  ;;  %v1132_v10 = vpop.f32.mrb[25].mxu0  ;;  %v356_v23 = vpop.f32.mrb[24].mxu1 }
 0x10b   :  { %v287_v12 = vpop.f32.mrb[26].mxu0  ;;  %1207 = vmatmul.mubr.bf16.gmra.mrb[48].mxu1 %v407_v6  ;;  %v357_v29 = vadd.f32 %v1691_v27, %v356_v23  ;;  %v1168_v30 = vpop.f32.mrb[25].mxu1  ;;  %v1378_v10 = vld [vmem:[%s2078_s3 + $0x30] sm:$0xff]  }
 0x10c   :  { %1426 = vtanh.f32 %v285_v9  ;;  %v288_v15 = vadd.f32 %v1691_v27, %v287_v12  ;;  %v1133_v16 = vpop.f32.mrb[27].mxu0  ;;  %1210 = vmatprep.mubr.msk.bf16.mxu1 %vm1513_vm0, %v1512_v0  ;;  %v359_v33 = vpop.f32.mrb[26].mxu1  ;;  %1271 = vmatpush3.bf16.msra.mxu0 %v1378_v10 }
 0x10d   :  { %1428 = vtanh.f32 %v352_v13  ;;  %v360_v35 = vadd.f32 %v1691_v27, %v359_v33  ;;  %v1169_v36 = vpop.f32.mrb[27].mxu1  ;;  %1272 = vmatprep.subr.bf16.mxu0 %v1512_v0 }
 0x10e   :  { %v1419_v18 = vpop.eup %1418  ;;  %1430 = vtanh.f32 %v288_v15 }
 0x10f   :  { %v1779_v20 = vpop.eup %1420  ;;  %1432 = vtanh.f32 %v357_v29 }
 0x110   :  { %v1423_v21 = vpop.eup %1422  ;;  %v416_v24 = vpack.c.bf16 %v1779_v20, %v1777_v17  ;;  %1273 = vmatpush3.bf16.msra.mxu0 %v1379_v62 }
 0x111   :  { %v292_v26 = vpop.f32.mrb[28].mxu0  ;;  %v408_v28 = vpack.c.bf16 %v1423_v21, %v1419_v18  ;;  %v1425_v39 = vpop.eup %1424 }
 0x112   :  { %v293_v31 = vadd.f32 %v1691_v27, %v292_v26  ;;  %v1136_v32 = vpop.f32.mrb[29].mxu0  ;;  %v364_v45 = vpop.f32.mrb[28].mxu1 }
 0x113   :  { %v295_v34 = vpop.f32.mrb[30].mxu0  ;;  %1211 = vmatmul.mubr.bf16.gmra.mrb[52].mxu1 %v408_v28  ;;  %v1172_v50 = vpop.f32.mrb[29].mxu1  ;;  %v365_v2 = vadd.f32 %v1691_v27, %v364_v45 }
 0x114   :  { %1434 = vtanh.f32 %v293_v31  ;;  %v296_v37 = vadd.f32 %v1691_v27, %v295_v34  ;;  %v1137_v38 = vpop.f32.mrb[31].mxu0  ;;  %1214 = vmatprep.mubr.msk.bf16.mxu1 %vm1513_vm0, %v1512_v0  ;;  %v367_v53 = vpop.f32.mrb[30].mxu1 }
 0x115   :  { %1436 = vtanh.f32 %v360_v35  ;;  %v1173_v55 = vpop.f32.mrb[31].mxu1 }
 0x116   :  { %v1427_v41 = vpop.eup %1426  ;;  %1438 = vtanh.f32 %v296_v37 }
 0x117   :  { %v1429_v42 = vpop.eup %1428 }
 0x118   :  { %v1431_v44 = vpop.eup %1430  ;;  %v417_v47 = vpack.c.bf16 %v1429_v42, %v1425_v39 }
 0x119   :  { %v300_v48 = vpop.f32.mrb[32].mxu0  ;;  %v409_v49 = vpack.c.bf16 %v1431_v44, %v1427_v41  ;;  %v1433_v58 = vpop.eup %1432 }
 0x11a   :  { %v301_v51 = vadd.f32 %v1691_v27, %v300_v48  ;;  %v1140_v52 = vpop.f32.mrb[33].mxu0 }
 0x11b   :  { %v303_v54 = vpop.f32.mrb[34].mxu0  ;;  %1215 = vmatmul.mubr.bf16.gmra.mrb[56].mxu1 %v409_v49 }
 0x11c   :  { %v304_v56 = vadd.f32 %v1691_v27, %v303_v54  ;;  %v1141_v57 = vpop.f32.mrb[35].mxu0  ;;  %1218 = vmatprep.mubr.msk.bf16.mxu1 %vm1513_vm0, %v1512_v0  ;;  %1440 = vtanh.f32 %v301_v51 }
 0x11e   :  { %v1435_v60 = vpop.eup %1434  ;;  %1442 = vtanh.f32 %v304_v56 }
 0x11f   :  { %v1437_v63 = vpop.eup %1436  ;;  %1444 = vtanh.f32 %v365_v2 }
 0x120   :  { %v1439_v1 = vpop.eup %1438  ;;  %v418_v4 = vpack.c.bf16 %v1437_v63, %v1433_v58 }
 0x121   :  { %v410_v6 = vpack.c.bf16 %v1439_v1, %v1435_v60 }
 0x123   :  { %1219 = vmatmul.mubr.bf16.gmra.mrb[60].mxu1 %v410_v6 }
 0x124   :  { %1222 = vmatprep.mubr.msk.bf16.mxu1 %vm1513_vm0, %v1512_v0 }
 0x126   :  { %v1441_v7 = vpop.eup %1440 }
 0x128   :  { %v1443_v8 = vpop.eup %1442 }
 0x129   :  { %v411_v9 = vpack.c.bf16 %v1443_v8, %v1441_v7 }
 0x12b   :  { %1223 = vmatmul.mubr.bf16.gmra.mrb[64].mxu1 %v411_v9 }
 0x12c   :  { %1226 = vmatprep.mubr.msk.bf16.mxu1 %vm1513_vm0, %v1512_v0 }
 0x133   :  { %1227 = vmatmul.mubr.bf16.gmra.mrb[68].mxu1 %v412_v5  ;;  %v1445_v5 = vpop.eup %1444 }
 0x134   :  { %1230 = vmatprep.mubr.msk.bf16.mxu1 %vm1513_vm0, %v1512_v0  ;;  %v419_v19 = vpack.c.bf16 %v1445_v5, %v1445_v5 }
 0x13b   :  { %1231 = vmatmul.mubr.bf16.gmra.mrb[72].mxu1 %v413_v25 }
 0x13c   :  { %1234 = vmatprep.mubr.msk.bf16.mxu1 %vm1513_vm0, %v1512_v0 }
 0x143   :  { %1235 = vmatmul.mubr.bf16.gmra.mrb[76].mxu1 %v414_v46 }
 0x144   :  { %1238 = vmatprep.mubr.msk.bf16.mxu1 %vm1513_vm0, %v1512_v0 }
 0x14b   :  { %1239 = vmatmul.mubr.bf16.gmra.mrb[80].mxu1 %v415_v3 }
 0x14c   :  { %1242 = vmatprep.mubr.msk.bf16.mxu1 %vm1513_vm0, %v1512_v0 }
 0x153   :  { %1243 = vmatmul.mubr.bf16.gmra.mrb[84].mxu1 %v416_v24 }
 0x154   :  { %1246 = vmatprep.mubr.msk.bf16.mxu1 %vm1513_vm0, %v1512_v0 }
 0x15b   :  { %1247 = vmatmul.mubr.bf16.gmra.mrb[88].mxu1 %v417_v47 }
 0x15c   :  { %1250 = vmatprep.mubr.msk.bf16.mxu1 %vm1513_vm0, %v1512_v0 }
 0x163   :  { %1251 = vmatmul.mubr.bf16.gmra.mrb[92].mxu1 %v418_v4 }
 0x164   :  { %1254 = vmatprep.mubr.msk.bf16.mxu1 %vm1513_vm0, %v1512_v0 }
 0x16b   :  { %1255 = vmatmul.mubr.bf16.gmra.mrb[96].mxu1 %v419_v19 }
 0x1be   :  { %v523_v25 = vpop.f32.mrb[32].mxu1 }
 0x1bf   :  { %v524_v27 = vadd.f32 %v1837_v22, %v523_v25  ;;  %v1192_v40 = vpop.f32.mrb[33].mxu1 }
 0x1c0   :  { %v526_v43 = vpop.f32.mrb[34].mxu1 }
 0x1c1   :  { %v527_v46 = vadd.f32 %v1837_v22, %v526_v43  ;;  %v1193_v59 = vpop.f32.mrb[35].mxu1  ;;  %1446 = vtanh.f32 %v524_v27 }
 0x1c3   :  { %1448 = vtanh.f32 %v527_v46 }
 0x1c6   :  { %v531_v61 = vpop.f32.mrb[36].mxu1 }
 0x1c7   :  { %v532_v3 = vadd.f32 %v1837_v22, %v531_v61  ;;  %v1196_v11 = vpop.f32.mrb[37].mxu1 }
 0x1c8   :  { %v534_v12 = vpop.f32.mrb[38].mxu1 }
 0x1c9   :  { %v535_v13 = vadd.f32 %v1837_v22, %v534_v12  ;;  %v1197_v14 = vpop.f32.mrb[39].mxu1  ;;  %1450 = vtanh.f32 %v532_v3 }
 0x1cb   :  { %1452 = vtanh.f32 %v535_v13  ;;  %v1447_v15 = vpop.eup %1446 }
 0x1cd   :  { %v1449_v16 = vpop.eup %1448 }
 0x1ce   :  { %v539_v17 = vpop.f32.mrb[40].mxu1  ;;  %v690_v18 = vpack.c.bf16 %v1449_v16, %v1447_v15 }
 0x1cf   :  { %v540_v20 = vadd.f32 %v1837_v22, %v539_v17  ;;  %v1200_v21 = vpop.f32.mrb[41].mxu1 }
 0x1d0   :  { %v542_v23 = vpop.f32.mrb[42].mxu1  ;;  %1275 = vmatmul.mubr.bf16.vlgmr.msra.gmra.mrb[36].mxu0 %v690_v18 }
 0x1d1   :  { %v543_v24 = vadd.f32 %v1837_v22, %v542_v23  ;;  %v1201_v26 = vpop.f32.mrb[43].mxu1  ;;  %1278 = vmatprep.mubr.msk.bf16.mxu0 %vm1513_vm0, %v1512_v0  ;;  %1454 = vtanh.f32 %v540_v20 }
 0x1d3   :  { %1456 = vtanh.f32 %v543_v24  ;;  %v1451_v28 = vpop.eup %1450 }
 0x1d5   :  { %v1453_v29 = vpop.eup %1452 }
 0x1d6   :  { %v547_v30 = vpop.f32.mrb[44].mxu1  ;;  %v691_v31 = vpack.c.bf16 %v1453_v29, %v1451_v28 }
 0x1d7   :  { %v548_v32 = vadd.f32 %v1837_v22, %v547_v30  ;;  %v1204_v33 = vpop.f32.mrb[45].mxu1 }
 0x1d8   :  { %v550_v34 = vpop.f32.mrb[46].mxu1  ;;  %1279 = vmatmul.mubr.bf16.gmra.mrb[40].mxu0 %v691_v31 }
 0x1d9   :  { %v551_v35 = vadd.f32 %v1837_v22, %v550_v34  ;;  %v1205_v36 = vpop.f32.mrb[47].mxu1  ;;  %1282 = vmatprep.mubr.msk.bf16.mxu0 %vm1513_vm0, %v1512_v0  ;;  %1458 = vtanh.f32 %v548_v32 }
 0x1db   :  { %1460 = vtanh.f32 %v551_v35  ;;  %v1455_v37 = vpop.eup %1454 }
 0x1dd   :  { %v1457_v38 = vpop.eup %1456 }
 0x1de   :  { %v555_v39 = vpop.f32.mrb[48].mxu1  ;;  %v692_v41 = vpack.c.bf16 %v1457_v38, %v1455_v37 }
 0x1df   :  { %v556_v42 = vadd.f32 %v1837_v22, %v555_v39  ;;  %v1208_v44 = vpop.f32.mrb[49].mxu1 }
 0x1e0   :  { %v558_v45 = vpop.f32.mrb[50].mxu1  ;;  %1283 = vmatmul.mubr.bf16.gmra.mrb[44].mxu0 %v692_v41 }
 0x1e1   :  { %v559_v47 = vadd.f32 %v1837_v22, %v558_v45  ;;  %v1209_v48 = vpop.f32.mrb[51].mxu1  ;;  %1286 = vmatprep.mubr.msk.bf16.mxu0 %vm1513_vm0, %v1512_v0  ;;  %1462 = vtanh.f32 %v556_v42 }
 0x1e3   :  { %1464 = vtanh.f32 %v559_v47  ;;  %v1459_v49 = vpop.eup %1458 }
 0x1e5   :  { %v1461_v50 = vpop.eup %1460 }
 0x1e6   :  { %v563_v51 = vpop.f32.mrb[52].mxu1  ;;  %v693_v52 = vpack.c.bf16 %v1461_v50, %v1459_v49 }
 0x1e7   :  { %v564_v53 = vadd.f32 %v1837_v22, %v563_v51  ;;  %v1212_v54 = vpop.f32.mrb[53].mxu1 }
 0x1e8   :  { %v566_v55 = vpop.f32.mrb[54].mxu1  ;;  %1287 = vmatmul.mubr.bf16.gmra.mrb[48].mxu0 %v693_v52 }
 0x1e9   :  { %v567_v56 = vadd.f32 %v1837_v22, %v566_v55  ;;  %v1213_v57 = vpop.f32.mrb[55].mxu1  ;;  %1290 = vmatprep.mubr.msk.bf16.mxu0 %vm1513_vm0, %v1512_v0  ;;  %1466 = vtanh.f32 %v564_v53 }
 0x1eb   :  { %1468 = vtanh.f32 %v567_v56  ;;  %v1463_v58 = vpop.eup %1462 }
 0x1ed   :  { %v1465_v60 = vpop.eup %1464 }
 0x1ee   :  { %v571_v63 = vpop.f32.mrb[56].mxu1  ;;  %v694_v1 = vpack.c.bf16 %v1465_v60, %v1463_v58 }
 0x1ef   :  { %v572_v4 = vadd.f32 %v1837_v22, %v571_v63  ;;  %v1216_v6 = vpop.f32.mrb[57].mxu1 }
 0x1f0   :  { %v574_v7 = vpop.f32.mrb[58].mxu1  ;;  %1291 = vmatmul.mubr.bf16.gmra.mrb[52].mxu0 %v694_v1 }
 0x1f1   :  { %v575_v8 = vadd.f32 %v1837_v22, %v574_v7  ;;  %v1217_v9 = vpop.f32.mrb[59].mxu1  ;;  %1294 = vmatprep.mubr.msk.bf16.mxu0 %vm1513_vm0, %v1512_v0  ;;  %1470 = vtanh.f32 %v572_v4 }
 0x1f3   :  { %1472 = vtanh.f32 %v575_v8  ;;  %v1467_v10 = vpop.eup %1466 }
 0x1f5   :  { %v1469_v62 = vpop.eup %1468 }
 0x1f6   :  { %v579_v2 = vpop.f32.mrb[60].mxu1  ;;  %v695_v5 = vpack.c.bf16 %v1469_v62, %v1467_v10 }
 0x1f7   :  { %v580_v19 = vadd.f32 %v1837_v22, %v579_v2  ;;  %v1220_v25 = vpop.f32.mrb[61].mxu1 }
 0x1f8   :  { %v582_v27 = vpop.f32.mrb[62].mxu1  ;;  %1295 = vmatmul.mubr.bf16.gmra.mrb[56].mxu0 %v695_v5 }
 0x1f9   :  { %v583_v40 = vadd.f32 %v1837_v22, %v582_v27  ;;  %v1221_v43 = vpop.f32.mrb[63].mxu1  ;;  %1298 = vmatprep.mubr.msk.bf16.mxu0 %vm1513_vm0, %v1512_v0  ;;  %1474 = vtanh.f32 %v580_v19 }
 0x1fb   :  { %1476 = vtanh.f32 %v583_v40  ;;  %v1471_v46 = vpop.eup %1470 }
 0x1fd   :  { %v1473_v59 = vpop.eup %1472 }
 0x1fe   :  { %v587_v61 = vpop.f32.mrb[64].mxu1  ;;  %v696_v3 = vpack.c.bf16 %v1473_v59, %v1471_v46 }
 0x1ff   :  { %v588_v11 = vadd.f32 %v1837_v22, %v587_v61  ;;  %v1224_v12 = vpop.f32.mrb[65].mxu1 }
 0x200   :  { %v590_v13 = vpop.f32.mrb[66].mxu1  ;;  %1299 = vmatmul.mubr.bf16.gmra.mrb[60].mxu0 %v696_v3 }
 0x201   :  { %v591_v14 = vadd.f32 %v1837_v22, %v590_v13  ;;  %v1225_v15 = vpop.f32.mrb[67].mxu1  ;;  %1302 = vmatprep.mubr.msk.bf16.mxu0 %vm1513_vm0, %v1512_v0  ;;  %1478 = vtanh.f32 %v588_v11 }
 0x203   :  { %1480 = vtanh.f32 %v591_v14  ;;  %v1475_v16 = vpop.eup %1474 }
 0x205   :  { %v1477_v17 = vpop.eup %1476 }
 0x206   :  { %v595_v18 = vpop.f32.mrb[68].mxu1  ;;  %v697_v20 = vpack.c.bf16 %v1477_v17, %v1475_v16 }
 0x207   :  { %v596_v21 = vadd.f32 %v1837_v22, %v595_v18  ;;  %v1228_v23 = vpop.f32.mrb[69].mxu1 }
 0x208   :  { %v598_v24 = vpop.f32.mrb[70].mxu1  ;;  %1303 = vmatmul.mubr.bf16.gmra.mrb[64].mxu0 %v697_v20 }
 0x209   :  { %v599_v26 = vadd.f32 %v1837_v22, %v598_v24  ;;  %v1229_v28 = vpop.f32.mrb[71].mxu1  ;;  %1306 = vmatprep.mubr.msk.bf16.mxu0 %vm1513_vm0, %v1512_v0  ;;  %1482 = vtanh.f32 %v596_v21 }
 0x20b   :  { %1484 = vtanh.f32 %v599_v26  ;;  %v1479_v29 = vpop.eup %1478 }
 0x20d   :  { %v1481_v30 = vpop.eup %1480 }
 0x20e   :  { %v603_v31 = vpop.f32.mrb[72].mxu1  ;;  %v698_v32 = vpack.c.bf16 %v1481_v30, %v1479_v29 }
 0x20f   :  { %v604_v33 = vadd.f32 %v1837_v22, %v603_v31  ;;  %v1232_v34 = vpop.f32.mrb[73].mxu1 }
 0x210   :  { %v606_v35 = vpop.f32.mrb[74].mxu1  ;;  %1307 = vmatmul.mubr.bf16.gmra.mrb[68].mxu0 %v698_v32 }
 0x211   :  { %v607_v36 = vadd.f32 %v1837_v22, %v606_v35  ;;  %v1233_v37 = vpop.f32.mrb[75].mxu1  ;;  %1310 = vmatprep.mubr.msk.bf16.mxu0 %vm1513_vm0, %v1512_v0  ;;  %1486 = vtanh.f32 %v604_v33 }
 0x213   :  { %1488 = vtanh.f32 %v607_v36  ;;  %v1483_v38 = vpop.eup %1482 }
 0x215   :  { %v1485_v39 = vpop.eup %1484 }
 0x216   :  { %v611_v41 = vpop.f32.mrb[76].mxu1  ;;  %v699_v42 = vpack.c.bf16 %v1485_v39, %v1483_v38 }
 0x217   :  { %v612_v44 = vadd.f32 %v1837_v22, %v611_v41  ;;  %v1236_v45 = vpop.f32.mrb[77].mxu1 }
 0x218   :  { %v614_v47 = vpop.f32.mrb[78].mxu1  ;;  %1311 = vmatmul.mubr.bf16.gmra.mrb[72].mxu0 %v699_v42 }
 0x219   :  { %v615_v48 = vadd.f32 %v1837_v22, %v614_v47  ;;  %v1237_v49 = vpop.f32.mrb[79].mxu1  ;;  %1314 = vmatprep.mubr.msk.bf16.mxu0 %vm1513_vm0, %v1512_v0  ;;  %1490 = vtanh.f32 %v612_v44 }
 0x21b   :  { %1492 = vtanh.f32 %v615_v48  ;;  %v1487_v50 = vpop.eup %1486 }
 0x21d   :  { %v1489_v51 = vpop.eup %1488 }
 0x21e   :  { %v619_v52 = vpop.f32.mrb[80].mxu1  ;;  %v700_v53 = vpack.c.bf16 %v1489_v51, %v1487_v50 }
 0x21f   :  { %v620_v54 = vadd.f32 %v1837_v22, %v619_v52  ;;  %v1240_v55 = vpop.f32.mrb[81].mxu1 }
 0x220   :  { %v622_v56 = vpop.f32.mrb[82].mxu1  ;;  %1315 = vmatmul.mubr.bf16.gmra.mrb[76].mxu0 %v700_v53 }
 0x221   :  { %v623_v57 = vadd.f32 %v1837_v22, %v622_v56  ;;  %v1241_v58 = vpop.f32.mrb[83].mxu1  ;;  %1318 = vmatprep.mubr.msk.bf16.mxu0 %vm1513_vm0, %v1512_v0  ;;  %1494 = vtanh.f32 %v620_v54 }
 0x223   :  { %1496 = vtanh.f32 %v623_v57  ;;  %v1491_v60 = vpop.eup %1490 }
 0x225   :  { %v1493_v63 = vpop.eup %1492 }
 0x226   :  { %v627_v1 = vpop.f32.mrb[84].mxu1  ;;  %v701_v4 = vpack.c.bf16 %v1493_v63, %v1491_v60 }
 0x227   :  { %v628_v6 = vadd.f32 %v1837_v22, %v627_v1  ;;  %v1244_v7 = vpop.f32.mrb[85].mxu1 }
 0x228   :  { %v630_v8 = vpop.f32.mrb[86].mxu1  ;;  %1319 = vmatmul.mubr.bf16.gmra.mrb[80].mxu0 %v701_v4 }
 0x229   :  { %v631_v9 = vadd.f32 %v1837_v22, %v630_v8  ;;  %v1245_v10 = vpop.f32.mrb[87].mxu1  ;;  %1322 = vmatprep.mubr.msk.bf16.mxu0 %vm1513_vm0, %v1512_v0  ;;  %1498 = vtanh.f32 %v628_v6 }
 0x22b   :  { %1500 = vtanh.f32 %v631_v9  ;;  %v1495_v62 = vpop.eup %1494 }
 0x22d   :  { %v1497_v2 = vpop.eup %1496 }
 0x22e   :  { %v635_v5 = vpop.f32.mrb[88].mxu1  ;;  %v702_v19 = vpack.c.bf16 %v1497_v2, %v1495_v62 }
 0x22f   :  { %v636_v25 = vadd.f32 %v1837_v22, %v635_v5  ;;  %v1248_v27 = vpop.f32.mrb[89].mxu1 }
 0x230   :  { %v638_v40 = vpop.f32.mrb[90].mxu1  ;;  %1323 = vmatmul.mubr.bf16.gmra.mrb[84].mxu0 %v702_v19 }
 0x231   :  { %v639_v43 = vadd.f32 %v1837_v22, %v638_v40  ;;  %v1249_v46 = vpop.f32.mrb[91].mxu1  ;;  %1326 = vmatprep.mubr.msk.bf16.mxu0 %vm1513_vm0, %v1512_v0  ;;  %1502 = vtanh.f32 %v636_v25 }
 0x233   :  { %1504 = vtanh.f32 %v639_v43  ;;  %v1499_v59 = vpop.eup %1498 }
 0x235   :  { %v1501_v61 = vpop.eup %1500 }
 0x236   :  { %v643_v3 = vpop.f32.mrb[92].mxu1  ;;  %v703_v11 = vpack.c.bf16 %v1501_v61, %v1499_v59 }
 0x237   :  { %v644_v12 = vadd.f32 %v1837_v22, %v643_v3  ;;  %v1252_v13 = vpop.f32.mrb[93].mxu1 }
 0x238   :  { %v646_v14 = vpop.f32.mrb[94].mxu1  ;;  %1327 = vmatmul.mubr.bf16.gmra.mrb[88].mxu0 %v703_v11 }
 0x239   :  { %v647_v15 = vadd.f32 %v1837_v22, %v646_v14  ;;  %v1253_v16 = vpop.f32.mrb[95].mxu1  ;;  %1330 = vmatprep.mubr.msk.bf16.mxu0 %vm1513_vm0, %v1512_v0  ;;  %1506 = vtanh.f32 %v644_v12 }
 0x23b   :  { %1508 = vtanh.f32 %v647_v15  ;;  %v1503_v17 = vpop.eup %1502 }
 0x23d   :  { %v1505_v18 = vpop.eup %1504 }
 0x23e   :  { %v651_v20 = vpop.f32.mrb[96].mxu1  ;;  %v704_v21 = vpack.c.bf16 %v1505_v18, %v1503_v17 }
 0x23f   :  { %v652_v23 = vadd.f32 %v1837_v22, %v651_v20  ;;  %v1256_v24 = vpop.f32.mrb[97].mxu1  ;;  %v1907_v22 = vld [vmem:[%s2077_s4 + $0x2] ss:$0 sm:$0xff] }
 0x240   :  { %v654_v26 = vpop.f32.mrb[98].mxu1  ;;  %1331 = vmatmul.mubr.bf16.gmra.mrb[92].mxu0 %v704_v21 }
 0x241   :  { %1510 = vtanh.f32 %v652_v23  ;;  %v1257_v28 = vpop.f32.mrb[99].mxu1  ;;  %1334 = vmatprep.mubr.msk.bf16.mxu0 %vm1513_vm0, %v1512_v0 }
 0x243   :  { %v1507_v29 = vpop.eup %1506 }
 0x245   :  { %v1509_v30 = vpop.eup %1508 }
 0x246   :  { %v705_v31 = vpack.c.bf16 %v1509_v30, %v1507_v29 }
 0x248   :  { %1335 = vmatmul.mubr.bf16.gmra.mrb[96].mxu0 %v705_v31 }
 0x249   :  { %1338 = vmatprep.mubr.msk.bf16.mxu0 %vm1513_vm0, %v1512_v0 }
 0x24b   :  { %v1511_v32 = vpop.eup %1510 }
 0x24c   :  { %v706_v33 = vpack.c.bf16 %v1511_v32, %v1511_v32 }
 0x250   :  { %1339 = vmatmul.mubr.bf16.gmra.mrb[100].mxu0 %v706_v33 }
 0x2a3   :  { %v810_v34 = vpop.f32.mrb[36].mxu0 }
 0x2a4   :  { %v811_v35 = vadd.f32 %v1907_v22, %v810_v34  ;;  %v1276_v36 = vpop.f32.mrb[37].mxu0 }
 0x2a5   :  { %v813_v37 = vpop.f32.mrb[38].mxu0 }
 0x2a6   :  { %945 = vst.msk [vmem:[%s2079_s5] sm:$0xff] %vm944_vm2, %v811_v35  ;;  %v814_v0 = vadd.f32 %v1907_v22, %v813_v37  ;;  %v1277_v38 = vpop.f32.mrb[39].mxu0 }
 0x2a8   :  { %946 = vst.msk [vmem:[%s2079_s5 + $0x8] sm:$0xff] %vm944_vm2, %v814_v0 }
 0x2ab   :  { %v818_v39 = vpop.f32.mrb[40].mxu0 }
 0x2ac   :  { %v819_v41 = vadd.f32 %v1907_v22, %v818_v39  ;;  %v1280_v42 = vpop.f32.mrb[41].mxu0 }
 0x2ad   :  { %v821_v44 = vpop.f32.mrb[42].mxu0 }
 0x2ae   :  { %947 = vst.msk [vmem:[%s2079_s5 + $0x10] sm:$0xff] %vm944_vm2, %v819_v41  ;;  %v822_v45 = vadd.f32 %v1907_v22, %v821_v44  ;;  %v1281_v47 = vpop.f32.mrb[43].mxu0 }
 0x2b0   :  { %948 = vst.msk [vmem:[%s2079_s5 + $0x18] sm:$0xff] %vm944_vm2, %v822_v45 }
 0x2b3   :  { %v826_v48 = vpop.f32.mrb[44].mxu0 }
 0x2b4   :  { %v827_v49 = vadd.f32 %v1907_v22, %v826_v48  ;;  %v1284_v50 = vpop.f32.mrb[45].mxu0 }
 0x2b5   :  { %v829_v51 = vpop.f32.mrb[46].mxu0 }
 0x2b6   :  { %949 = vst.msk [vmem:[%s2079_s5 + $0x20] sm:$0xff] %vm944_vm2, %v827_v49  ;;  %v830_v52 = vadd.f32 %v1907_v22, %v829_v51  ;;  %v1285_v53 = vpop.f32.mrb[47].mxu0 }
 0x2b8   :  { %950 = vst.msk [vmem:[%s2079_s5 + $0x28] sm:$0xff] %vm944_vm2, %v830_v52 }
 0x2bb   :  { %v834_v54 = vpop.f32.mrb[48].mxu0 }
 0x2bc   :  { %v835_v55 = vadd.f32 %v1907_v22, %v834_v54  ;;  %v1288_v56 = vpop.f32.mrb[49].mxu0 }
 0x2bd   :  { %v837_v57 = vpop.f32.mrb[50].mxu0 }
 0x2be   :  { %951 = vst.msk [vmem:[%s2079_s5 + $0x30] sm:$0xff] %vm944_vm2, %v835_v55  ;;  %v838_v58 = vadd.f32 %v1907_v22, %v837_v57  ;;  %v1289_v60 = vpop.f32.mrb[51].mxu0 }
 0x2c0   :  { %952 = vst.msk [vmem:[%s2079_s5 + $0x38] sm:$0xff] %vm944_vm2, %v838_v58 }
 0x2c3   :  { %v842_v63 = vpop.f32.mrb[52].mxu0 }
 0x2c4   :  { %v843_v1 = vadd.f32 %v1907_v22, %v842_v63  ;;  %v1292_v4 = vpop.f32.mrb[53].mxu0 }
 0x2c5   :  { %v845_v6 = vpop.f32.mrb[54].mxu0 }
 0x2c6   :  { %953 = vst.msk [vmem:[%s2079_s5 + $0x40] sm:$0xff] %vm944_vm2, %v843_v1  ;;  %v846_v7 = vadd.f32 %v1907_v22, %v845_v6  ;;  %v1293_v8 = vpop.f32.mrb[55].mxu0 }
 0x2c8   :  { %954 = vst.msk [vmem:[%s2079_s5 + $0x48] sm:$0xff] %vm944_vm2, %v846_v7 }
 0x2cb   :  { %v850_v9 = vpop.f32.mrb[56].mxu0 }
 0x2cc   :  { %v851_v10 = vadd.f32 %v1907_v22, %v850_v9  ;;  %v1296_v62 = vpop.f32.mrb[57].mxu0 }
 0x2cd   :  { %v853_v2 = vpop.f32.mrb[58].mxu0 }
 0x2ce   :  { %955 = vst.msk [vmem:[%s2079_s5 + $0x50] sm:$0xff] %vm944_vm2, %v851_v10  ;;  %v854_v5 = vadd.f32 %v1907_v22, %v853_v2  ;;  %v1297_v19 = vpop.f32.mrb[59].mxu0 }
 0x2d0   :  { %956 = vst.msk [vmem:[%s2079_s5 + $0x58] sm:$0xff] %vm944_vm2, %v854_v5 }
 0x2d3   :  { %v858_v25 = vpop.f32.mrb[60].mxu0 }
 0x2d4   :  { %v859_v27 = vadd.f32 %v1907_v22, %v858_v25  ;;  %v1300_v40 = vpop.f32.mrb[61].mxu0 }
 0x2d5   :  { %v861_v43 = vpop.f32.mrb[62].mxu0 }
 0x2d6   :  { %957 = vst.msk [vmem:[%s2079_s5 + $0x60] sm:$0xff] %vm944_vm2, %v859_v27  ;;  %v862_v46 = vadd.f32 %v1907_v22, %v861_v43  ;;  %v1301_v59 = vpop.f32.mrb[63].mxu0 }
 0x2d8   :  { %958 = vst.msk [vmem:[%s2079_s5 + $0x68] sm:$0xff] %vm944_vm2, %v862_v46 }
 0x2db   :  { %v866_v61 = vpop.f32.mrb[64].mxu0 }
 0x2dc   :  { %v867_v3 = vadd.f32 %v1907_v22, %v866_v61  ;;  %v1304_v11 = vpop.f32.mrb[65].mxu0 }
 0x2dd   :  { %v869_v12 = vpop.f32.mrb[66].mxu0 }
 0x2de   :  { %959 = vst.msk [vmem:[%s2079_s5 + $0x70] sm:$0xff] %vm944_vm2, %v867_v3  ;;  %v870_v13 = vadd.f32 %v1907_v22, %v869_v12  ;;  %v1305_v14 = vpop.f32.mrb[67].mxu0 }
 0x2e0   :  { %960 = vst.msk [vmem:[%s2079_s5 + $0x78] sm:$0xff] %vm944_vm2, %v870_v13 }
 0x2e3   :  { %v874_v15 = vpop.f32.mrb[68].mxu0 }
 0x2e4   :  { %v875_v16 = vadd.f32 %v1907_v22, %v874_v15  ;;  %v1308_v17 = vpop.f32.mrb[69].mxu0 }
 0x2e5   :  { %v877_v18 = vpop.f32.mrb[70].mxu0 }
 0x2e6   :  { %961 = vst.msk [vmem:[%s2079_s5 + $0x80] sm:$0xff] %vm944_vm2, %v875_v16  ;;  %v878_v20 = vadd.f32 %v1907_v22, %v877_v18  ;;  %v1309_v21 = vpop.f32.mrb[71].mxu0 }
 0x2e8   :  { %962 = vst.msk [vmem:[%s2079_s5 + $0x88] sm:$0xff] %vm944_vm2, %v878_v20 }
 0x2eb   :  { %v882_v23 = vpop.f32.mrb[72].mxu0 }
 0x2ec   :  { %v883_v24 = vadd.f32 %v1907_v22, %v882_v23  ;;  %v1312_v26 = vpop.f32.mrb[73].mxu0 }
 0x2ed   :  { %v885_v28 = vpop.f32.mrb[74].mxu0 }
 0x2ee   :  { %963 = vst.msk [vmem:[%s2079_s5 + $0x90] sm:$0xff] %vm944_vm2, %v883_v24  ;;  %v886_v29 = vadd.f32 %v1907_v22, %v885_v28  ;;  %v1313_v30 = vpop.f32.mrb[75].mxu0 }
 0x2f0   :  { %964 = vst.msk [vmem:[%s2079_s5 + $0x98] sm:$0xff] %vm944_vm2, %v886_v29 }
 0x2f3   :  { %v890_v31 = vpop.f32.mrb[76].mxu0 }
 0x2f4   :  { %v891_v32 = vadd.f32 %v1907_v22, %v890_v31  ;;  %v1316_v33 = vpop.f32.mrb[77].mxu0 }
 0x2f5   :  { %v893_v34 = vpop.f32.mrb[78].mxu0 }
 0x2f6   :  { %965 = vst.msk [vmem:[%s2079_s5 + $0xa0] sm:$0xff] %vm944_vm2, %v891_v32  ;;  %v894_v35 = vadd.f32 %v1907_v22, %v893_v34  ;;  %v1317_v36 = vpop.f32.mrb[79].mxu0 }
 0x2f8   :  { %966 = vst.msk [vmem:[%s2079_s5 + $0xa8] sm:$0xff] %vm944_vm2, %v894_v35 }
 0x2fb   :  { %v898_v37 = vpop.f32.mrb[80].mxu0 }
 0x2fc   :  { %v899_v0 = vadd.f32 %v1907_v22, %v898_v37  ;;  %v1320_v38 = vpop.f32.mrb[81].mxu0 }
 0x2fd   :  { %v901_v39 = vpop.f32.mrb[82].mxu0 }
 0x2fe   :  { %967 = vst.msk [vmem:[%s2079_s5 + $0xb0] sm:$0xff] %vm944_vm2, %v899_v0  ;;  %v902_v41 = vadd.f32 %v1907_v22, %v901_v39  ;;  %v1321_v42 = vpop.f32.mrb[83].mxu0 }
 0x300   :  { %968 = vst.msk [vmem:[%s2079_s5 + $0xb8] sm:$0xff] %vm944_vm2, %v902_v41 }
 0x303   :  { %v906_v44 = vpop.f32.mrb[84].mxu0 }
 0x304   :  { %v907_v45 = vadd.f32 %v1907_v22, %v906_v44  ;;  %v1324_v47 = vpop.f32.mrb[85].mxu0 }
 0x305   :  { %v909_v48 = vpop.f32.mrb[86].mxu0 }
 0x306   :  { %969 = vst.msk [vmem:[%s2079_s5 + $0xc0] sm:$0xff] %vm944_vm2, %v907_v45  ;;  %v910_v49 = vadd.f32 %v1907_v22, %v909_v48  ;;  %v1325_v50 = vpop.f32.mrb[87].mxu0 }
 0x308   :  { %970 = vst.msk [vmem:[%s2079_s5 + $0xc8] sm:$0xff] %vm944_vm2, %v910_v49 }
 0x30b   :  { %v914_v51 = vpop.f32.mrb[88].mxu0 }
 0x30c   :  { %v915_v52 = vadd.f32 %v1907_v22, %v914_v51  ;;  %v1328_v53 = vpop.f32.mrb[89].mxu0 }
 0x30d   :  { %v917_v54 = vpop.f32.mrb[90].mxu0 }
 0x30e   :  { %971 = vst.msk [vmem:[%s2079_s5 + $0xd0] sm:$0xff] %vm944_vm2, %v915_v52  ;;  %v918_v55 = vadd.f32 %v1907_v22, %v917_v54  ;;  %v1329_v56 = vpop.f32.mrb[91].mxu0 }
 0x310   :  { %972 = vst.msk [vmem:[%s2079_s5 + $0xd8] sm:$0xff] %vm944_vm2, %v918_v55 }
 0x313   :  { %v922_v57 = vpop.f32.mrb[92].mxu0 }
 0x314   :  { %v923_v58 = vadd.f32 %v1907_v22, %v922_v57  ;;  %v1332_v60 = vpop.f32.mrb[93].mxu0 }
 0x315   :  { %v925_v63 = vpop.f32.mrb[94].mxu0 }
 0x316   :  { %973 = vst.msk [vmem:[%s2079_s5 + $0xe0] sm:$0xff] %vm944_vm2, %v923_v58  ;;  %v926_v1 = vadd.f32 %v1907_v22, %v925_v63  ;;  %v1333_v4 = vpop.f32.mrb[95].mxu0 }
 0x318   :  { %974 = vst.msk [vmem:[%s2079_s5 + $0xe8] sm:$0xff] %vm944_vm2, %v926_v1 }
 0x31b   :  { %v930_v6 = vpop.f32.mrb[96].mxu0 }
 0x31c   :  { %v931_v7 = vadd.f32 %v1907_v22, %v930_v6  ;;  %v1336_v8 = vpop.f32.mrb[97].mxu0 }
 0x31d   :  { %v933_v9 = vpop.f32.mrb[98].mxu0 }
 0x31e   :  { %975 = vst.msk [vmem:[%s2079_s5 + $0xf0] sm:$0xff] %vm944_vm2, %v931_v7  ;;  %v934_v10 = vadd.f32 %v1907_v22, %v933_v9  ;;  %v1337_v62 = vpop.f32.mrb[99].mxu0 }
 0x320   :  { %976 = vst.msk [vmem:[%s2079_s5 + $0xf8] sm:$0xff] %vm944_vm2, %v934_v10 }
 0x323   :  { %v938_v2 = vpop.f32.mrb[100].mxu0 }
 0x324   :  { %v939_v5 = vadd.f32 %v1907_v22, %v938_v2  ;;  %v1340_v19 = vpop.f32.mrb[101].mxu0 }
 0x325   :  { %v941_v25 = vpop.f32.mrb[102].mxu0 }
 0x326   :  { %977 = vst.msk [vmem:[%s2079_s5 + $0x100] sm:$0xff] %vm944_vm2, %v939_v5  ;;  %v1341_v27 = vpop.f32.mrb[103].mxu0 }

</bundles_post_ra>
